<compile_context>
chip_gen: v7x
topology: tpu7x:2x2x1
jax: 0.10.0
libtpu: 0.0.40
codegen_flags: <defaults>
</compile_context>

<pallas_src>
import jax
import jax.numpy as jnp
import numpy as np
from jax.experimental import pallas as pl
from jax.experimental.pallas import tpu as pltpu


def _round_up(x, m):
    return ((x + m - 1) // m) * m


def cluster_keeping_rc_kernel(d_ref, a_ref, x_ref, w_ref, o_ref):
    """One row-tile of the forward pass.

    d_ref : (TM, 1)   diagonal gate rows d = theta*phi*psi   (per grid step)
    a_ref : (TM, Np)  row tile of A_hat                      (pipelined per step)
    x_ref : (Np, Dp)  full node features                     (resident every step)
    w_ref : (Dp, Dp)  aggregation weight                     (resident every step)
    o_ref : (TM, Dp)  output row tile (lane-dense: Dp is a multiple of 128)
    """
    tm = o_ref.shape[0]
    # f(X, A_hat) = A_hat @ X @ W  (GCN-style aggregation), f32 MXU accumulate.
    # (bf16-casting A_hat/X/W would ~2x the MXU rate on v6e/v7x, but the harness
    #  checks against an f32 reference at 1e-4, so operands stay f32 here.)
    agg = jnp.dot(a_ref[...], x_ref[...], preferred_element_type=jnp.float32)
    agg = jnp.dot(agg, w_ref[...], preferred_element_type=jnp.float32)
    h = jnp.maximum(agg, 0.0)                        # sigma = ReLU
    # Diagonal gating fused into the epilogue on the VPU (no dense xi matmuls):
    #   xi @ h == d * h,   (I - xi) @ X == (1 - d) * X_rows
    d = d_ref[...]                                    # (TM, 1) lane-broadcast
    row0 = pl.multiple_of(pl.program_id(0) * tm, tm)
    x_rows = x_ref[pl.ds(row0, tm), :]                # residual rows from resident X
    o_ref[...] = (d * h + (1.0 - d) * x_rows).astype(o_ref.dtype)


def cluster_keeping_rc(X, A_hat, W, theta, phi, psi, *, tm=128):
    """Wrapper: builds the (N,) gate vector (glue), zero-pads to TPU-friendly
    shapes (lanes -> multiple of 128, rows -> multiple of TM; exact for this
    forward), and tiles the node dimension so A_hat row tiles are software-
    pipelined while X and W stay resident in VMEM."""
    N, D = X.shape
    LANE = 128
    Dp = _round_up(max(D, LANE), LANE)
    tm = min(tm, _round_up(N, 8))
    Np = _round_up(N, tm)

    d = (theta * phi * psi).astype(jnp.float32)       # diagonal of xi, as a vector

    Xp = jnp.zeros((Np, Dp), jnp.float32).at[:N, :D].set(X.astype(jnp.float32))
    Ap = jnp.zeros((Np, Np), jnp.float32).at[:N, :N].set(A_hat.astype(jnp.float32))
    Wp = jnp.zeros((Dp, Dp), jnp.float32).at[:D, :D].set(W.astype(jnp.float32))
    dp = jnp.zeros((Np, 1), jnp.float32).at[:N, 0].set(d)

    out = pl.pallas_call(
        cluster_keeping_rc_kernel,
        out_shape=jax.ShapeDtypeStruct((Np, Dp), jnp.float32),
        grid=(Np // tm,),
        in_specs=[
            pl.BlockSpec((tm, 1), lambda i: (i, 0)),      # d gate rows
            pl.BlockSpec((tm, Np), lambda i: (i, 0)),     # A_hat row tile
            pl.BlockSpec((Np, Dp), lambda i: (0, 0)),     # X (resident)
            pl.BlockSpec((Dp, Dp), lambda i: (0, 0)),     # W (resident)
        ],
        out_specs=pl.BlockSpec((tm, Dp), lambda i: (i, 0)),
        compiler_params=pltpu.CompilerParams(
            # Row tiles are fully independent -> megacore-parallel on v7x.
            dimension_semantics=("parallel",)),
    )(dp, Ap, Xp, Wp)
    return out[:N, :D]


def reference_forward(X, A_hat, W, theta, phi, psi):
    """Pure-JAX reference mirroring the PyTorch forward (eval path)."""
    d = (theta * phi * psi).astype(jnp.float32)
    hp = jax.lax.dot(A_hat, X, precision=jax.lax.Precision.HIGHEST)
    hp = jax.lax.dot(hp, W, precision=jax.lax.Precision.HIGHEST)
    h = jax.nn.relu(hp)
    # xi is diagonal -> xi @ h == d[:, None] * h exactly
    return d[:, None] * h + (1.0 - d)[:, None] * X


if __name__ == "__main__":
    n_nodes = 256   # N  (multiple of TM=128 -> grid of 2, no row padding)
    d_feat = 128    # D  (lane-dense output, no column padding)
    K = 5           # clusters (unused on the eval path)

    key = jax.random.PRNGKey(0)
    kx, ka, kw, kt, kp, ks = jax.random.split(key, 6)

    # Node features
    X = jax.random.normal(kx, (n_nodes, d_feat), dtype=jnp.float32)

    # Symmetric normalized adjacency with self-loops (A_hat)
    A = (jax.random.uniform(ka, (n_nodes, n_nodes)) > 0.9).astype(jnp.float32)
    A = jnp.maximum(A, A.T) + jnp.eye(n_nodes, dtype=jnp.float32)
    deg = jnp.sum(A, axis=1)
    d_inv_sqrt = 1.0 / jnp.sqrt(deg)
    A_hat = d_inv_sqrt[:, None] * A * d_inv_sqrt[None, :]

    # Aggregation weight (synthetic GCN layer inside `f`)
    W = jax.random.normal(kw, (d_feat, d_feat), dtype=jnp.float32) * 0.1

    # Module buffers: theta (scalar), phi (N,), psi (N,) — nonzero so both the
    # aggregated and residual terms are exercised.
    theta = jax.random.uniform(kt, (), dtype=jnp.float32)
    phi = jax.random.uniform(kp, (n_nodes,), dtype=jnp.float32)
    psi = jax.random.uniform(ks, (n_nodes,), dtype=jnp.float32)

    out = cluster_keeping_rc(X, A_hat, W, theta, phi, psi)
    out = jax.block_until_ready(out)

    ref = reference_forward(X, A_hat, W, theta, phi, psi)
    np.testing.assert_allclose(np.asarray(out), np.asarray(ref),
                               rtol=1e-4, atol=1e-4)
    print("KERNEL_OK")
</pallas_src>

<mosaic_0001>
module attributes {stable_mosaic.version = 11 : i64} {
  func.func @cluster_keeping_rc_kernel(%arg0: i32, %arg1: memref<128x1xf32, #tpu.memory_space<vmem>>, %arg2: memref<128x256xf32, #tpu.memory_space<vmem>>, %arg3: memref<256x128xf32, #tpu.memory_space<vmem>>, %arg4: memref<128x128xf32, #tpu.memory_space<vmem>>, %arg5: memref<128x128xf32, #tpu.memory_space<vmem>>) attributes {dimension_semantics = [#tpu.dimension_semantics<parallel>], iteration_bounds = array<i64: 2>, scalar_prefetch = 0 : i64, scratch_operands = 0 : i64, tpu.core_type = #tpu.core_type<tc>, window_params = [{transform_indices = @transform_0, window_bounds = array<i64: 128, 1>}, {transform_indices = @transform_1, window_bounds = array<i64: 128, 256>}, {pipeline_mode = #tpu.pipeline_mode<synchronous>, transform_indices = @transform_2, window_bounds = array<i64: 256, 128>}, {pipeline_mode = #tpu.pipeline_mode<synchronous>, transform_indices = @transform_3, window_bounds = array<i64: 128, 128>}, {transform_indices = @transform_4, window_bounds = array<i64: 128, 128>}]} {
    %c0 = arith.constant 0 : index
    %c0_0 = arith.constant 0 : index
    %0 = vector.load %arg2[%c0, %c0_0] : memref<128x256xf32, #tpu.memory_space<vmem>>, vector<128x256xf32>
    %c0_1 = arith.constant 0 : index
    %c0_2 = arith.constant 0 : index
    %1 = vector.load %arg3[%c0_1, %c0_2] : memref<256x128xf32, #tpu.memory_space<vmem>>, vector<256x128xf32>
    %cst = arith.constant dense<0.000000e+00> : vector<128x128xf32>
    %2 = tpu.matmul %0, %1, %cst {dimension_numbers = #tpu.dot_dimension_numbers<[1], [0], [0], [1], [0, 0, 1, 1], [], []>} : vector<128x256xf32>, vector<256x128xf32>, vector<128x128xf32> -> vector<128x128xf32>
    %c0_3 = arith.constant 0 : index
    %c0_4 = arith.constant 0 : index
    %3 = vector.load %arg4[%c0_3, %c0_4] : memref<128x128xf32, #tpu.memory_space<vmem>>, vector<128x128xf32>
    %cst_5 = arith.constant dense<0.000000e+00> : vector<128x128xf32>
    %4 = tpu.matmul %2, %3, %cst_5 {dimension_numbers = #tpu.dot_dimension_numbers<[1], [0], [0], [1], [0, 0, 1, 1], [], []>} : vector<128x128xf32>, vector<128x128xf32>, vector<128x128xf32> -> vector<128x128xf32>
    %cst_6 = arith.constant 0.000000e+00 : f32
    %5 = vector.broadcast %cst_6 : f32 to vector<128x128xf32>
    %6 = arith.maximumf %4, %5 : vector<128x128xf32>
    %c0_7 = arith.constant 0 : index
    %c0_8 = arith.constant 0 : index
    %7 = vector.load %arg1[%c0_7, %c0_8] : memref<128x1xf32, #tpu.memory_space<vmem>>, vector<128x1xf32>
    %c128_i32 = arith.constant 128 : i32
    %8 = arith.muli %arg0, %c128_i32 : i32
    %9 = tpu.assume_multiple %8, 128 : i32
    %10 = arith.index_cast %9 : i32 to index
    %c0_9 = arith.constant 0 : index
    %11 = vector.load %arg3[%10, %c0_9] : memref<256x128xf32, #tpu.memory_space<vmem>>, vector<128x128xf32>
    %12 = vector.broadcast %7 : vector<128x1xf32> to vector<128x128xf32>
    %13 = arith.mulf %12, %6 : vector<128x128xf32>
    %cst_10 = arith.constant 1.000000e+00 : f32
    %14 = vector.broadcast %cst_10 : f32 to vector<128x1xf32>
    %15 = arith.subf %14, %7 : vector<128x1xf32>
    %16 = vector.broadcast %15 : vector<128x1xf32> to vector<128x128xf32>
    %17 = arith.mulf %16, %11 : vector<128x128xf32>
    %18 = arith.addf %13, %17 : vector<128x128xf32>
    %c0_11 = arith.constant 0 : index
    %c0_12 = arith.constant 0 : index
    %19 = vector.load %arg5[%c0_11, %c0_12] : memref<128x128xf32, #tpu.memory_space<vmem>>, vector<128x128xf32>
    tpu.vector_store %arg5[%c0_11, %c0_12], %18 {strides = array<i32>} : memref<128x128xf32, #tpu.memory_space<vmem>>, vector<128x128xf32>,
    return
  }
  func.func @transform_0(%arg0: i32) -> (i32, i32) {
    %c0_i32 = arith.constant 0 : i32
    %c0_i32_0 = arith.constant 0 : i32
    return %arg0, %c0_i32 : i32, i32
  }
  func.func @transform_1(%arg0: i32) -> (i32, i32) {
    %c0_i32 = arith.constant 0 : i32
    %c0_i32_0 = arith.constant 0 : i32
    return %arg0, %c0_i32 : i32, i32
  }
  func.func @transform_2(%arg0: i32) -> (i32, i32) {
    %c0_i32 = arith.constant 0 : i32
    %c0_i32_0 = arith.constant 0 : i32
    %c0_i32_1 = arith.constant 0 : i32
    return %c0_i32, %c0_i32_0 : i32, i32
  }
  func.func @transform_3(%arg0: i32) -> (i32, i32) {
    %c0_i32 = arith.constant 0 : i32
    %c0_i32_0 = arith.constant 0 : i32
    %c0_i32_1 = arith.constant 0 : i32
    return %c0_i32, %c0_i32_0 : i32, i32
  }
  func.func @transform_4(%arg0: i32) -> (i32, i32) {
    %c0_i32 = arith.constant 0 : i32
    %c0_i32_0 = arith.constant 0 : i32
    return %arg0, %c0_i32 : i32, i32
  }
}

</mosaic_0001>

<bundles_post_ra>
// kernel: tpu_custom_call.1
= control target key start
LH: loop header
LB: loop body
LE: loop exit
PB: predicated region body
PF: predicated region fallthrough
CT: control target
= control target key end

     0   :  { %9 = vsyncpa [#allocation3], 0  ;;  %s1938_s0 = inlined_call_operand.vmem [shape: f32[256,1], index: 0, kind: input, shape index: {}]   ;;  %s1939_s1 = inlined_call_operand.hbm [shape: f32[256,256], index: 1, kind: input, shape index: {}]   ;;  %s1940_s2 = inlined_call_operand.vmem [shape: f32[256,128], index: 2, kind: input, shape index: {}]   ;;  %s1941_s3 = inlined_call_operand.hbm [shape: f32[128,128], index: 3, kind: input, shape index: {}]   ;;  %s1942_s4 = inlined_call_operand.hbm [shape: f32[256,128], index: 4, kind: output, shape index: {}]  }
   0x1   :  { %11 = vsyncpa [#allocation3 + $0x1], 0 }
   0x2   :  { %12 = vsyncpa [#allocation6], 0 }
   0x3   :  { %13 = vsyncpa [#allocation4], 0 }
   0x4   :  { %15 = vsyncpa [#allocation4 + $0x1], 0  ;;  %s1513_s15 = smov 0   ;;  %s1515_s16 = smov 0  }
   0x5   :  { %s1517_s17 = smov 0   ;;  %s1519_s18 = smov 0  }
   0x6 LB: > { %s1534_s19 = sadd.s32 4294967295, %s1476_s18   ;;  %s1027_s20 = sadd.s32 4294967294, %s1476_s18   ;;  %s1476_s18 = sphi %s1519_s18, %s1962_s18   ;;  %s1472_s17 = sphi %s1517_s17, %s1961_s17   ;;  %s1468_s16 = sphi %s1515_s16, %s1960_s16   ;;  %s1464_s15 = sphi %s1513_s15, %s1959_s15  }
   0x7   : > { %p67_p0 = scmp.ne.s32.totalorder %s1468_s16, %s1464_s15  ;;  %p1943_p1 = scmp.eq.s32.totalorder %s1534_s19, 0 }
   0x8   : > { %p139_p3 = scmp.eq.s32.totalorder %s1027_s20, 1  ;;  %p1028_p5 = scmp.ge.s32.totalorder %s1476_s18, 1 }
   0x9   : > { %p1543_p4 = por %p1943_p1, %p67_p0  ;;  %p146_p7 = scmp.lt.s32.totalorder %s1476_s18, 3 }
   0xa   : > { %p1548_p6 = por %p139_p3, %p67_p0  ;;  %s1478_s24 = smov [#allocation5]  }
   0xb   : > { %s1946_s21 = scalar_select %p1543_p4, 1, 0 }
   0xc   : > { %s1947_s22 = scalar_select %p1548_p6, 1, 0 }
   0xd   : > { %p1553_p8 = pnand %p1028_p5, %p146_p7  ;;  %s161_s25 = sshll.u32 %s1478_s24, 4  ;;  %s1557_s25 = int_to_ptr.vmem [resolvable:$true] %s161_s25 }
   0xe   : > { %s1569_s27 = sadd.s32 1, %s1476_s18   ;;  %s54_s28 = sadd.s32 1, %s1472_s17 }
   0xf   : > { %s1948_s23 = scalar_select %p1553_p8, 1, 0 }
  0x10   : > { %p1290_p9 = pneg %p1553_p8  ;;  %s51_s29 = ssub.s32 %s1476_s18, %s1569_s27 }
  0x11   : > { %s1348_s6 = scalar_lea.hbm %s1941_s3, 2048 }
  0x12   : > { %p1564_p11 = pnand %p1290_p9, %p1943_p1  ;;  %p1349_p12 = scmp.ne.s32.totalorder %s1941_s3, %s1348_s6 }
  0x13   : > { %p1355_p5 = scmp.lt.u32.totalorder %s1348_s6, %s1941_s3 }
  0x14   : > { %p1350_p13 = pneg %p1564_p11 }
  0x16   : > { %p1351_p0 = pnand %p1350_p13, %p1349_p12 }
  0x18   : > { %p1352_p3 = pneg %p1351_p0 }
  0x1a   : > { %p1357_p7 = pnand %p1355_p5, %p1352_p3 }
  0x1c   : > { %1360 = shalt.err (!%p1357_p7)
}
  0x1d   : > { %s1361_s11 = scalar_lea.vmem %s1557_s25, 2048  ;;  %p1369_p2 = scmp.lt.s32.totalorder %s1557_s25, %s1557_s25 }
  0x1e   : > { %p1362_p9 = scmp.ne.s32.totalorder %s1557_s25, %s1361_s11  ;;  %p1370_p6 = scmp.lt.s32.totalorder %s1361_s11, %s1361_s11 }
  0x20   : > { %p1364_p10 = pnand %p1362_p9, %p1350_p13  ;;  %p1371_p4 = por %p1370_p6, %p1369_p2 }
  0x22   : > { %p1365_p1 = pneg %p1364_p10 }
  0x24   : > { %p1372_p8 = pnand %p1371_p4, %p1365_p1 }
  0x26   : > { %1375 = shalt.err (!%p1372_p8)
}
  0x27   : > { %s1479_s12 = smov 128   ;;  %s1480_s13 = smov 8  }
  0x28   : > { %1293 = dma.hbm_to_vmem [thread:$0]  (!%p1564_p11), %s1941_s3, 2048, %s1557_s25, [#allocation6], %s1479_s12, %s1479_s12, %s1480_s13  }
  0x29   : > { %p52_p2 = scmp.eq.s32.totalorder %s51_s29, 0  ;;  %p61_p1 = scmp.ne.s32.totalorder %s1472_s17, %s1468_s16 }
  0x2a   : > { %p62_p4 = scmp.eq.s32.totalorder %s1476_s18, 0  ;;  %p1303_p6 = scmp.lt.s32.totalorder %s1476_s18, 2 }
  0x2b   : > { %s1600_s24 = scalar_select %p52_p2, %s1472_s17, %s54_s28  }
  0x2c   : > { %p63_p8 = por %p62_p4, %p61_p1  ;;  %p1950_p10 = scmp.eq.s32.totalorder %s1534_s19, 1 }
  0x2d   : > { %s184_s5 = sand.u32 1, %s1472_s17   ;;  %s1048_s6 = sshll.u32 %s1476_s18, 12 }
  0x2e   : > { %p1604_p12 = por %p1950_p10, %p61_p1  ;;  %s1031_s7 = sshll.u32 %s184_s5, 8 }
  0x2f   : > { %s1613_s9 = scalar_lea.hbm %s1939_s1, %s1048_s6  ;;  %s188_s25 = scalar_lea.vmem [#allocation2], %s1031_s7 }
  0x30   : > { %s196_s28 = sshll.u32 %s188_s25, 4  ;;  %p1615_p11 = pnand %p1303_p6, %p63_p8  ;;  %s1619_s28 = int_to_ptr.vmem [resolvable:$true] %s196_s28 }
  0x31   : > { %s1621_s10 = scalar_lea.sflag [#allocation3], %s184_s5  ;;  %s1376_s11 = scalar_lea.hbm %s1613_s9, 4096 }
  0x32   : > { %p1377_p13 = scmp.ne.s32.totalorder %s1613_s9, %s1376_s11  ;;  %p1378_p0 = pneg %p1615_p11 }
  0x33   : > { %s1381_s14 = scalar_lea.hbm %s1939_s1, 8192  ;;  %p1382_p7 = scmp.lt.u32.totalorder %s1613_s9, %s1939_s1 }
  0x34   : > { %p1379_p3 = pnand %p1378_p0, %p1377_p13  ;;  %p1383_p9 = scmp.lt.u32.totalorder %s1381_s14, %s1376_s11 }
  0x35   : > { %p1385_p1 = scmp.lt.u32.totalorder %s1376_s11, %s1613_s9 }
  0x36   : > { %p1380_p5 = pneg %p1379_p3  ;;  %p1384_p2 = por %p1383_p9, %p1382_p7 }
  0x38   : > { %p1386_p4 = por %p1385_p1, %p1384_p2 }
  0x3a   : > { %p1387_p6 = pnand %p1386_p4, %p1380_p5 }
  0x3c   : > { %1390 = shalt.err (!%p1387_p6)
}
  0x3d   : > { %s1391_s5 = scalar_lea.vmem %s1619_s28, 4096  ;;  %s1481_s7 = smov [#allocation2]  }
  0x3e   : > { %p1392_p8 = scmp.ne.s32.totalorder %s1619_s28, %s1391_s5  ;;  %s1396_s26 = sshll.u32 %s1481_s7, 4  ;;  %s1397_s26 = int_to_ptr.vmem [resolvable:$false] %s1396_s26 }
  0x3f   : > { %s1398_s8 = scalar_lea.vmem %s1397_s26, 8192  ;;  %p1399_p3 = scmp.lt.s32.totalorder %s1619_s28, %s1397_s26 }
  0x40   : > { %p1394_p10 = pnand %p1392_p8, %p1378_p0  ;;  %p1400_p7 = scmp.lt.s32.totalorder %s1398_s8, %s1391_s5 }
  0x42   : > { %p1395_p13 = pneg %p1394_p10  ;;  %p1401_p9 = por %p1400_p7, %p1399_p3 }
  0x44   : > { %p1402_p2 = pnand %p1401_p9, %p1395_p13 }
  0x46   : > { %1405 = shalt.err (!%p1402_p2)
}
  0x47   : > { %s1482_s25 = smov 256   ;;  %s1483_s11 = smov 16  }
  0x48   : > { %1297 = dma.hbm_to_vmem [thread:$0]  (!%p1615_p11), %s1613_s9, 4096, %s1619_s28, %s1621_s10, %s1482_s25, %s1482_s25, %s1483_s11  }
  0x49   : > { %p1953_p0 = scmp.ne.s32.totalorder %s1948_s23, 0 }
  0x4a   : > { %s1652_s12 = sand.u32 (!%p1953_p0), 1, %s1468_s16   ;;  %p1954_p5 = scmp.ne.s32.totalorder (!%p1953_p0), %s1946_s21, 0 }
  0x4b   : > { %208 = sbr.rel (%p1953_p0) target bundleno = 630 (0x276), region = 36  ;;  %s1036_s13 = sshll.u32 (!%p1953_p0), %s1652_s12, 8 }
  0x4c   : > { %s211_s14 = scalar_lea.sflag (!%p1953_p0), [#allocation3], %s1652_s12  ;;  %s1656_s20 = scalar_lea.vmem (!%p1953_p0), [#allocation2], %s1036_s13 }
  0x52   : > { %1451 = dma.done.wait (%p1954_p5), %s211_s14, 4096  }
  0x53   : > { %1453 = vsyncadd (%p1954_p5), %s211_s14, 4294963200  ;;  %p1955_p11 = scmp.eq.s32.totalorder %s1534_s19, 0 }
  0x55   : > { %1455 = dma.done.wait (%p1955_p11), [#allocation6], 2048   ;;  %p1956_p1 = pmov %p1955_p11 }
  0x56   : > { %v304_v0 = vld [vmem:[%s1940_s2 + $0x80] sm:$0xff]  ;;  %v305_v1 = vld [vmem:[%s1940_s2 + $0x88] sm:$0xff]  ;;  %v306_v5 = vld [vmem:[%s1940_s2 + $0x90] sm:$0xff]  ;;  %s1039_s10 = sshll.u32 %s1534_s19, 4  ;;  %s1038_s11 = sshll.u32 %s1652_s12, 7 }
  0x57   : > { %1457 = vsyncadd (%p1956_p1), [#allocation6], 4294965248  ;;  %v288_v2 = vld [vmem:[%s1940_s2] sm:$0xff]  ;;  %v1218_v3 = vpack.c.bf16 %v305_v1, %v304_v0  ;;  %v289_v4 = vld [vmem:[%s1940_s2 + $0x8] sm:$0xff]  ;;  %p249_p4 = scmp.lt.s32.totalorder %s1039_s10, 31  ;;  %s1845_s13 = scalar_lea.vmem [#allocation7], %s1038_s11 }
  0x58   : > { %v307_v6 = vld [vmem:[%s1940_s2 + $0x98] sm:$0xff]  ;;  %v1220_v7 = vpack.c.bf16 %v289_v4, %v288_v2  ;;  %v290_v9 = vld [vmem:[%s1940_s2 + $0x10] sm:$0xff]  ;;  %v308_v11 = vld [vmem:[%s1940_s2 + $0xa0] sm:$0xff]  ;;  %s1049_s14 = sshll.u32 %s1534_s19, 11  ;;  %s930_s23 = sshll.u32 %s1845_s13, 4  ;;  %s1892_s23 = int_to_ptr.vmem [resolvable:$true] %s930_s23 }
  0x59   : > { %v1222_v8 = vpack.c.bf16 %v307_v6, %v306_v5  ;;  %v291_v10 = vld [vmem:[%s1940_s2 + $0x18] sm:$0xff]  ;;  %1219 = vmatprep.subr.bf16.mxu0 %v1218_v3  ;;  %v309_v12 = vld [vmem:[%s1940_s2 + $0xa8] sm:$0xff]  ;;  %v292_v15 = vld [vmem:[%s1940_s2 + $0x20] sm:$0xff]  ;;  %s1964_s10 = smov (!%p249_p4, %s1039_s10), 31  ;;  %s1890_s29 = scalar_lea.hbm %s1942_s4, %s1049_s14 }
  0x5a   : > { %1221 = vmatpush3.bf16.msra.mxu0 %v1220_v7  ;;  %v1224_v13 = vpack.c.bf16 %v291_v10, %v290_v9  ;;  %v1226_v14 = vpack.c.bf16 %v309_v12, %v308_v11  ;;  %v293_v16 = vld [vmem:[%s1940_s2 + $0x28] sm:$0xff]  ;;  %v310_v17 = vld [vmem:[%s1940_s2 + $0xb0] sm:$0xff]  ;;  %v311_v18 = vld [vmem:[%s1940_s2 + $0xb8] sm:$0xff]  ;;  %s1040_s6 = sshll.u32 %s1964_s10, 3  ;;  %s1406_s10 = scalar_lea.vmem %s1892_s23, 2048 }
  0x5b   : > { %1223 = vmatprep.subr.bf16.mxu0 %v1222_v8  ;;  %v1228_v19 = vpack.c.bf16 %v293_v16, %v292_v15  ;;  %v1230_v20 = vpack.c.bf16 %v311_v18, %v310_v17  ;;  %v294_v21 = vld [vmem:[%s1940_s2 + $0x30] sm:$0xff]  ;;  %v295_v22 = vld [vmem:[%s1940_s2 + $0x38] sm:$0xff]  ;;  %v312_v23 = vld [vmem:[%s1940_s2 + $0xc0] sm:$0xff]  ;;  %s1798_s7 = scalar_lea.vmem %s1938_s0, %s1040_s6  ;;  %p1407_p6 = scmp.ne.s32.totalorder %s1892_s23, %s1406_s10 }
  0x5c   : > { %v313_v24 = vld [vmem:[%s1940_s2 + $0xc8] sm:$0xff]  ;;  %v1232_v26 = vpack.c.bf16 %v295_v22, %v294_v21  ;;  %v296_v28 = vld [vmem:[%s1940_s2 + $0x40] sm:$0xff]  ;;  %v314_v30 = vld [vmem:[%s1940_s2 + $0xd0] sm:$0xff]  ;;  %s1485_s6 = smov [#allocation7]  }
  0x5d   : > { %v257_v25 = vld [vmem:[%s1656_s20 + $0x8] sm:$0xff]  ;;  %v1234_v27 = vpack.c.bf16 %v313_v24, %v312_v23  ;;  %v315_v31 = vld [vmem:[%s1940_s2 + $0xd8] sm:$0xff]  ;;  %v298_v34 = vld [vmem:[%s1940_s2 + $0x50] sm:$0xff]  ;;  %p1408_p8 = pnand %p1407_p6, %p1604_p12  ;;  %s1410_s21 = sshll.u32 %s1485_s6, 4  ;;  %s1411_s21 = int_to_ptr.vmem [resolvable:$false] %s1410_s21 }
  0x5e   : > { %1225 = vmatpush3.bf16.msra.mxu0 %v1224_v13  ;;  %384 = vmatprep.mubr.f32.mxu0 %v257_v25  ;;  %v297_v29 = vld [vmem:[%s1940_s2 + $0x48] sm:$0xff]  ;;  %v1238_v33 = vpack.c.bf16 %v315_v31, %v314_v30  ;;  %v299_v35 = vld [vmem:[%s1940_s2 + $0x58] sm:$0xff]  ;;  %v316_v36 = vld [vmem:[%s1940_s2 + $0xe0] sm:$0xff]  ;;  %s1412_s5 = scalar_lea.vmem %s1411_s21, 4096  ;;  %p1413_p13 = scmp.lt.s32.totalorder %s1892_s23, %s1411_s21 }
  0x5f   : > { %1227 = vmatprep.subr.bf16.mxu0 %v1226_v14  ;;  %v1236_v32 = vpack.c.bf16 %v297_v29, %v296_v28  ;;  %v317_v37 = vld [vmem:[%s1940_s2 + $0xe8] sm:$0xff]  ;;  %v1240_v38 = vpack.c.bf16 %v299_v35, %v298_v34  ;;  %v300_v39 = vld [vmem:[%s1940_s2 + $0x60] sm:$0xff]  ;;  %v318_v42 = vld [vmem:[%s1940_s2 + $0xf0] sm:$0xff]  ;;  %p1409_p10 = pneg %p1408_p8  ;;  %p1414_p3 = scmp.lt.s32.totalorder %s1412_s5, %s1406_s10 }
  0x60   : > { %v301_v40 = vld [vmem:[%s1940_s2 + $0x68] sm:$0xff]  ;;  %v1242_v41 = vpack.c.bf16 %v317_v37, %v316_v36  ;;  %v465_v43 = vld [vmem:[#allocation5] sm:$0xff]  ;;  %v319_v45 = vld [vmem:[%s1940_s2 + $0xf8] sm:$0xff] }
  0x61   : > { %v466_v44 = vld [vmem:[#allocation5 + $0x8] sm:$0xff]  ;;  %v467_v47 = vld [vmem:[#allocation5 + $0x10] sm:$0xff]  ;;  %v468_v48 = vld [vmem:[#allocation5 + $0x18] sm:$0xff]  ;;  %v1244_v52 = vpack.c.bf16 %v301_v40, %v300_v39  ;;  %v1246_v53 = vpack.c.bf16 %v319_v45, %v318_v42  ;;  %v1484_v40 = vmov 0   ;;  %p1415_p7 = por %p1414_p3, %p1413_p13 }
  0x62   : > { %1229 = vmatpush3.bf16.msra.mxu0 %v1228_v19  ;;  %v1250_v46 = vpack.c.bf16 %v466_v44, %v465_v43  ;;  %v1254_v49 = vpack.c.bf16 %v468_v48, %v467_v47  ;;  %v469_v50 = vld [vmem:[#allocation5 + $0x20] sm:$0xff]  ;;  %v470_v51 = vld [vmem:[#allocation5 + $0x28] sm:$0xff]  ;;  %v302_v54 = vld [vmem:[%s1940_s2 + $0x70] sm:$0xff]  ;;  %1347 = vset.pattern.permute.xlu1 %v1484_v40 }
  0x63   : > { %1231 = vmatprep.subr.bf16.mxu0 %v1230_v20  ;;  %v303_v55 = vld [vmem:[%s1940_s2 + $0x78] sm:$0xff]  ;;  %v1258_v56 = vpack.c.bf16 %v470_v51, %v469_v50  ;;  %v471_v57 = vld [vmem:[#allocation5 + $0x30] sm:$0xff]  ;;  %v473_v61 = vld [vmem:[#allocation5 + $0x40] sm:$0xff]  ;;  %1346 = vset.pattern.permute.xlu0 %v1484_v40  ;;  %p1416_p9 = pnand %p1415_p7, %p1409_p10 }
  0x64   : > { %1251 = vmatprep.subr.bf16.mxu1 %v1250_v46  ;;  %v472_v58 = vld [vmem:[#allocation5 + $0x38] sm:$0xff]  ;;  %v1248_v59 = vpack.c.bf16 %v303_v55, %v302_v54  ;;  %v474_v62 = vld [vmem:[#allocation5 + $0x48] sm:$0xff]  ;;  %v256_v63 = vld [vmem:[%s1656_s20] sm:$0xff] }
  0x65   : > { %1253 = vmatpush3.bf16.msra.mxu1 %v1250_v46  ;;  %v1262_v60 = vpack.c.bf16 %v472_v58, %v471_v57  ;;  %v259_v0 = vld [vmem:[%s1656_s20 + $0x18] sm:$0xff]  ;;  %v1266_v1 = vpack.c.bf16 %v474_v62, %v473_v61  ;;  %v475_v2 = vld [vmem:[#allocation5 + $0x50] sm:$0xff]  ;;  %v261_v5 = vld [vmem:[%s1656_s20 + $0x28] sm:$0xff] }
  0x66   : > { %1233 = vmatpush3.bf16.msra.mxu0 %v1232_v26  ;;  %1255 = vmatprep.subr.bf16.mxu1 %v1254_v49  ;;  %v476_v3 = vld [vmem:[#allocation5 + $0x58] sm:$0xff]  ;;  %v258_v4 = vld [vmem:[%s1656_s20 + $0x10] sm:$0xff]  ;;  %v260_v7 = vld [vmem:[%s1656_s20 + $0x20] sm:$0xff] }
  0x67   : > { %1235 = vmatprep.subr.bf16.mxu0 %v1234_v27  ;;  %v1270_v6 = vpack.c.bf16 %v476_v3, %v475_v2  ;;  %v263_v8 = vld [vmem:[%s1656_s20 + $0x38] sm:$0xff]  ;;  %v262_v9 = vld [vmem:[%s1656_s20 + $0x30] sm:$0xff]  ;;  %v265_v10 = vld [vmem:[%s1656_s20 + $0x48] sm:$0xff] }
  0x68   : > { %v264_v11 = vld [vmem:[%s1656_s20 + $0x40] sm:$0xff]  ;;  %v267_v12 = vld [vmem:[%s1656_s20 + $0x58] sm:$0xff]  ;;  %v266_v13 = vld [vmem:[%s1656_s20 + $0x50] sm:$0xff] }
  0x69   : > { %1257 = vmatpush3.bf16.msra.mxu1 %v1254_v49  ;;  %v269_v14 = vld [vmem:[%s1656_s20 + $0x68] sm:$0xff]  ;;  %v268_v15 = vld [vmem:[%s1656_s20 + $0x60] sm:$0xff]  ;;  %v271_v16 = vld [vmem:[%s1656_s20 + $0x78] sm:$0xff] }
  0x6a   : > { %1237 = vmatpush3.bf16.msra.mxu0 %v1236_v32  ;;  %1259 = vmatprep.subr.bf16.mxu1 %v1258_v56  ;;  %v270_v17 = vld [vmem:[%s1656_s20 + $0x70] sm:$0xff]  ;;  %v273_v18 = vld [vmem:[%s1656_s20 + $0x88] sm:$0xff]  ;;  %v272_v19 = vld [vmem:[%s1656_s20 + $0x80] sm:$0xff] }
  0x6b   : > { %1239 = vmatprep.subr.bf16.mxu0 %v1238_v33  ;;  %v275_v20 = vld [vmem:[%s1656_s20 + $0x98] sm:$0xff]  ;;  %v274_v21 = vld [vmem:[%s1656_s20 + $0x90] sm:$0xff]  ;;  %v277_v22 = vld [vmem:[%s1656_s20 + $0xa8] sm:$0xff] }
  0x6c   : > { %v276_v23 = vld [vmem:[%s1656_s20 + $0xa0] sm:$0xff]  ;;  %v279_v24 = vld [vmem:[%s1656_s20 + $0xb8] sm:$0xff]  ;;  %v278_v25 = vld [vmem:[%s1656_s20 + $0xb0] sm:$0xff] }
  0x6d   : > { %1261 = vmatpush3.bf16.msra.mxu1 %v1258_v56  ;;  %v281_v26 = vld [vmem:[%s1656_s20 + $0xc8] sm:$0xff]  ;;  %v280_v27 = vld [vmem:[%s1656_s20 + $0xc0] sm:$0xff]  ;;  %v283_v28 = vld [vmem:[%s1656_s20 + $0xd8] sm:$0xff] }
  0x6e   : > { %1241 = vmatpush3.bf16.msra.mxu0 %v1240_v38  ;;  %1263 = vmatprep.subr.bf16.mxu1 %v1262_v60  ;;  %v282_v29 = vld [vmem:[%s1656_s20 + $0xd0] sm:$0xff]  ;;  %v285_v30 = vld [vmem:[%s1656_s20 + $0xe8] sm:$0xff]  ;;  %v284_v31 = vld [vmem:[%s1656_s20 + $0xe0] sm:$0xff] }
  0x6f   : > { %1243 = vmatprep.subr.bf16.mxu0 %v1242_v41  ;;  %v287_v32 = vld [vmem:[%s1656_s20 + $0xf8] sm:$0xff]  ;;  %v286_v33 = vld [vmem:[%s1656_s20 + $0xf0] sm:$0xff]  ;;  %v477_v34 = vld [vmem:[#allocation5 + $0x60] sm:$0xff]  ;;  %s1041_s20 = sshll.u32 %s1534_s19, 7  ;;  %s917_s19 = scalar_lea.sflag [#allocation4], %s1652_s12 }
  0x70   : > { %v478_v35 = vld [vmem:[#allocation5 + $0x68] sm:$0xff]  ;;  %v479_v37 = vld [vmem:[#allocation5 + $0x70] sm:$0xff]  ;;  %v480_v38 = vld [vmem:[#allocation5 + $0x78] sm:$0xff]  ;;  %s1840_s25 = scalar_lea.vmem %s1940_s2, %s1041_s20 }
  0x71   : > { %1265 = vmatpush3.bf16.msra.mxu1 %v1262_v60  ;;  %v1274_v36 = vpack.c.bf16 %v478_v35, %v477_v34  ;;  %v1278_v39 = vpack.c.bf16 %v480_v38, %v479_v37  ;;  %v644_v41 = vld [vmem:[%s1798_s7 + $0x10] sm:$0xff]  ;;  %v642_v42 = vld [vmem:[%s1798_s7] sm:$0xff]  ;;  %v645_v43 = vld [vmem:[%s1798_s7 + $0x18] sm:$0xff] }
  0x72   : > { %1245 = vmatpush3.bf16.msra.mxu0 %v1244_v52  ;;  %1267 = vmatprep.subr.bf16.mxu1 %v1266_v1  ;;  %v643_v44 = vld [vmem:[%s1798_s7 + $0x8] sm:$0xff]  ;;  %v646_v46 = vld [vmem:[%s1798_s7 + $0x20] sm:$0xff]  ;;  %v649_v47 = vld [vmem:[%s1798_s7 + $0x38] sm:$0xff]  ;;  %v772_v57 = vsub.f32 1.0, %v642_v42  ;;  %v775_v60 = vsub.f32 1.0, %v645_v43 }
  0x73   : > { %1247 = vmatprep.subr.bf16.mxu0 %v1246_v53  ;;  %688 = vperm.xlu1 %1347, %v644_v41   ;;  %v647_v45 = vld [vmem:[%s1798_s7 + $0x28] sm:$0xff]  ;;  %v648_v48 = vld [vmem:[%s1798_s7 + $0x30] sm:$0xff]  ;;  %v650_v50 = vld [vmem:[%s1798_s7 + $0x40] sm:$0xff]  ;;  %v773_v58 = vsub.f32 1.0, %v643_v44  ;;  %v776_v62 = vsub.f32 1.0, %v646_v46 }
  0x74   : > { %678 = vperm.xlu0 %1346, %v642_v42   ;;  %v651_v49 = vld [vmem:[%s1798_s7 + $0x48] sm:$0xff]  ;;  %v653_v51 = vld [vmem:[%s1798_s7 + $0x58] sm:$0xff]  ;;  %v652_v52 = vld [vmem:[%s1798_s7 + $0x50] sm:$0xff]  ;;  %v777_v61 = vsub.f32 1.0, %v647_v45  ;;  %v780_v2 = vsub.f32 1.0, %v650_v50 }
  0x75   : > { %1269 = vmatpush3.bf16.msra.mxu1 %v1266_v1  ;;  %v655_v53 = vld [vmem:[%s1798_s7 + $0x68] sm:$0xff]  ;;  %v654_v54 = vld [vmem:[%s1798_s7 + $0x60] sm:$0xff]  ;;  %v657_v55 = vld [vmem:[%s1798_s7 + $0x78] sm:$0xff]  ;;  %v781_v1 = vsub.f32 1.0, %v651_v49  ;;  %v783_v3 = vsub.f32 1.0, %v653_v51 }
  0x76   : > { %1249 = vmatpush3.bf16.msra.mxu0 %v1248_v59  ;;  %1271 = vmatprep.subr.bf16.mxu1 %v1270_v6  ;;  %v656_v56 = vld [vmem:[%s1798_s7 + $0x70] sm:$0xff]  ;;  %v774_v59 = vsub.f32 1.0, %v644_v41 }
  0x77   : > { %693 = vperm.xlu1 %1347, %v645_v43  }
  0x78   : > { %683 = vperm.xlu0 %1346, %v643_v44  }
  0x79   : > { %385 = vmatmul.mubr.f32.vlgmr.msra.gmra.mrb[0].mxu0 %v256_v63  ;;  %1273 = vmatpush3.bf16.msra.mxu1 %v1270_v6  ;;  %v779_v63 = vsub.f32 1.0, %v649_v47  ;;  %v784_v6 = vsub.f32 1.0, %v654_v54 }
  0x7a   : > { %389 = vmatprep.mubr.f32.mxu0 %v259_v0  ;;  %1275 = vmatprep.subr.bf16.mxu1 %v1274_v36  ;;  %v778_v0 = vsub.f32 1.0, %v648_v48 }
  0x7b   : > { %703 = vperm.xlu1 %1347, %v647_v45  }
  0x7c   : > { %698 = vperm.xlu0 %1346, %v646_v46  }
  0x7d   : > { %390 = vmatmul.mubr.f32.gmra.mrb[2].mxu0 %v258_v4  ;;  %1277 = vmatpush3.bf16.msra.mxu1 %v1274_v36  ;;  %v782_v4 = vsub.f32 1.0, %v652_v52 }
  0x7e   : > { %394 = vmatprep.mubr.f32.mxu0 %v261_v5  ;;  %1279 = vmatprep.subr.bf16.mxu1 %v1278_v39  ;;  %v785_v5 = vsub.f32 1.0, %v655_v53 }
  0x7f   : > { %713 = vperm.xlu1 %1347, %v649_v47  }
  0x80   : > { %708 = vperm.xlu0 %1346, %v648_v48  }
  0x81   : > { %395 = vmatmul.mubr.f32.gmra.mrb[4].mxu0 %v260_v7  ;;  %1281 = vmatpush3.bf16.msra.mxu1 %v1278_v39  ;;  %v787_v7 = vsub.f32 1.0, %v657_v55 }
  0x82   : > { %399 = vmatprep.mubr.f32.mxu0 %v263_v8  ;;  %v786_v8 = vsub.f32 1.0, %v656_v56 }
  0x83   : > { %723 = vperm.xlu1 %1347, %v651_v49  }
  0x84   : > { %718 = vperm.xlu0 %1346, %v650_v50  }
  0x85   : > { %400 = vmatmul.mubr.f32.gmra.mrb[6].mxu0 %v262_v9 }
  0x86   : > { %404 = vmatprep.mubr.f32.mxu0 %v265_v10 }
  0x87   : > { %733 = vperm.xlu1 %1347, %v653_v51  }
  0x88   : > { %728 = vperm.xlu0 %1346, %v652_v52  }
  0x89   : > { %405 = vmatmul.mubr.f32.gmra.mrb[8].mxu0 %v264_v11 }
  0x8a   : > { %409 = vmatprep.mubr.f32.mxu0 %v267_v12 }
  0x8b   : > { %743 = vperm.xlu1 %1347, %v655_v53  }
  0x8c   : > { %738 = vperm.xlu0 %1346, %v654_v54  }
  0x8d   : > { %410 = vmatmul.mubr.f32.gmra.mrb[10].mxu0 %v266_v13 }
  0x8e   : > { %414 = vmatprep.mubr.f32.mxu0 %v269_v14 }
  0x8f   : > { %753 = vperm.xlu1 %1347, %v657_v55  }
  0x90   : > { %748 = vperm.xlu0 %1346, %v656_v56  }
  0x91   : > { %415 = vmatmul.mubr.f32.gmra.mrb[12].mxu0 %v268_v15 }
  0x92   : > { %419 = vmatprep.mubr.f32.mxu0 %v271_v16 }
  0x93   : > { %795 = vperm.xlu1 %1347, %v773_v58  }
  0x94   : > { %790 = vperm.xlu0 %1346, %v772_v57  }
  0x95   : > { %420 = vmatmul.mubr.f32.gmra.mrb[14].mxu0 %v270_v17 }
  0x96   : > { %424 = vmatprep.mubr.f32.mxu0 %v273_v18 }
  0x97   : > { %805 = vperm.xlu1 %1347, %v775_v60  }
  0x98   : > { %800 = vperm.xlu0 %1346, %v774_v59  }
  0x99   : > { %425 = vmatmul.mubr.f32.gmra.mrb[16].mxu0 %v272_v19 }
  0x9a   : > { %429 = vmatprep.mubr.f32.mxu0 %v275_v20 }
  0x9b   : > { %815 = vperm.xlu1 %1347, %v777_v61  }
  0x9c   : > { %810 = vperm.xlu0 %1346, %v776_v62  }
  0x9d   : > { %430 = vmatmul.mubr.f32.gmra.mrb[18].mxu0 %v274_v21 }
  0x9e   : > { %434 = vmatprep.mubr.f32.mxu0 %v277_v22 }
  0x9f   : > { %825 = vperm.xlu1 %1347, %v779_v63  }
  0xa0   : > { %820 = vperm.xlu0 %1346, %v778_v0  }
  0xa1   : > { %435 = vmatmul.mubr.f32.gmra.mrb[20].mxu0 %v276_v23 }
  0xa2   : > { %439 = vmatprep.mubr.f32.mxu0 %v279_v24 }
  0xa3   : > { %835 = vperm.xlu1 %1347, %v781_v1  }
  0xa4   : > { %830 = vperm.xlu0 %1346, %v780_v2  }
  0xa5   : > { %440 = vmatmul.mubr.f32.gmra.mrb[22].mxu0 %v278_v25 }
  0xa6   : > { %444 = vmatprep.mubr.f32.mxu0 %v281_v26 }
  0xa7   : > { %845 = vperm.xlu1 %1347, %v783_v3  }
  0xa8   : > { %840 = vperm.xlu0 %1346, %v782_v4  }
  0xa9   : > { %445 = vmatmul.mubr.f32.gmra.mrb[24].mxu0 %v280_v27 }
  0xaa   : > { %449 = vmatprep.mubr.f32.mxu0 %v283_v28 }
  0xab   : > { %855 = vperm.xlu1 %1347, %v785_v5  }
  0xac   : > { %850 = vperm.xlu0 %1346, %v784_v6  }
  0xad   : > { %450 = vmatmul.mubr.f32.gmra.mrb[26].mxu0 %v282_v29 }
  0xae   : > { %454 = vmatprep.mubr.f32.mxu0 %v285_v30 }
  0xaf   : > { %865 = vperm.xlu1 %1347, %v787_v7  }
  0xb0   : > { %860 = vperm.xlu0 %1346, %v786_v8  }
  0xb1   : > { %455 = vmatmul.mubr.f32.gmra.mrb[28].mxu0 %v284_v31 }
  0xb2   : > { %459 = vmatprep.mubr.f32.mxu0 %v287_v32 }
  0xb5   : > { %460 = vmatmul.mubr.f32.gmra.mrb[30].mxu0 %v286_v33 }
  0xf2   : > { %v689_v57 = vpop.permute.xlu1 %688 }
  0xf3   : > { %v679_v58 = vpop.permute.xlu0 %678 }
  0xf6   : > { %v694_v59 = vpop.permute.xlu1 %693 }
  0xf7   : > { %v684_v60 = vpop.permute.xlu0 %683 }
  0xfa   : > { %v704_v61 = vpop.permute.xlu1 %703 }
  0xfb   : > { %v699_v62 = vpop.permute.xlu0 %698 }
  0xfe   : > { %v1816_v63 = vpop.permute.xlu1 %713 }
  0xff   : > { %v1818_v0 = vpop.permute.xlu0 %708 }
 0x102   : > { %v1820_v1 = vpop.permute.xlu1 %723 }
 0x103   : > { %v1822_v2 = vpop.permute.xlu0 %718 }
 0x106   : > { %v1824_v3 = vpop.permute.xlu1 %733 }
 0x107   : > { %v1826_v4 = vpop.permute.xlu0 %728 }
 0x10a   : > { %v1828_v5 = vpop.permute.xlu1 %743 }
 0x10b   : > { %v1830_v6 = vpop.permute.xlu0 %738 }
 0x10e   : > { %v1833_v7 = vpop.permute.xlu1 %753 }
 0x10f   : > { %v1835_v8 = vpop.permute.xlu0 %748 }
 0x14c   : > { %v1082_v9 = vpop.f32.mrb[0].mxu0 }
 0x14d   : > { %v1083_v10 = vpop.f32.mrb[1].mxu0 }
 0x14e   : > { %v1084_v11 = vadd.f32 %v1083_v10, %v1082_v9  ;;  %v661_v9 = vld [vmem:[%s1840_s25 + $0x8] sm:$0xff] }
 0x150   : > { %v1085_v12 = vpop.f32.mrb[2].mxu0  ;;  %1194 = vmatprep.mubr.f32.mxu1 %v1084_v11  ;;  %v660_v11 = vld [vmem:[%s1840_s25] sm:$0xff] }
 0x151   : > { %v1086_v13 = vpop.f32.mrb[3].mxu0 }
 0x152   : > { %v1087_v14 = vadd.f32 %v1086_v13, %v1085_v12 }
 0x154   : > { %v1088_v15 = vpop.f32.mrb[4].mxu0  ;;  %1195 = vmatmul.mubr.f32.vlgmr.msra.gmra.mrb[0].mxu1 %v1087_v14  ;;  %v796_v14 = vpop.permute.xlu1 %795 }
 0x155   : > { %v1089_v16 = vpop.f32.mrb[5].mxu0 }
 0x156   : > { %v1090_v17 = vadd.f32 %v1089_v16, %v1088_v15  ;;  %v869_v16 = vmul.f32 %v796_v14, %v661_v9 }
 0x158   : > { %v1091_v18 = vpop.f32.mrb[6].mxu0  ;;  %1197 = vmatprep.mubr.f32.mxu1 %v1090_v17  ;;  %v791_v17 = vpop.permute.xlu0 %790 }
 0x159   : > { %v1092_v19 = vpop.f32.mrb[7].mxu0 }
 0x15a   : > { %v1093_v20 = vadd.f32 %v1092_v19, %v1091_v18  ;;  %v868_v19 = vmul.f32 %v791_v17, %v660_v11  ;;  %v669_v11 = vld [vmem:[%s1840_s25 + $0x48] sm:$0xff] }
 0x15c   : > { %v1094_v21 = vpop.f32.mrb[8].mxu0  ;;  %1198 = vmatmul.mubr.f32.gmra.mrb[2].mxu1 %v1093_v20 }
 0x15d   : > { %v1095_v22 = vpop.f32.mrb[9].mxu0 }
 0x15e   : > { %v1096_v23 = vadd.f32 %v1095_v22, %v1094_v21 }
 0x160   : > { %v1097_v24 = vpop.f32.mrb[10].mxu0  ;;  %1200 = vmatprep.mubr.f32.mxu1 %v1096_v23  ;;  %v663_v23 = vld [vmem:[%s1840_s25 + $0x18] sm:$0xff] }
 0x161   : > { %v1098_v25 = vpop.f32.mrb[11].mxu0 }
 0x162   : > { %v1099_v26 = vadd.f32 %v1098_v25, %v1097_v24  ;;  %v662_v25 = vld [vmem:[%s1840_s25 + $0x10] sm:$0xff] }
 0x164   : > { %v1100_v27 = vpop.f32.mrb[12].mxu0  ;;  %1201 = vmatmul.mubr.f32.gmra.mrb[4].mxu1 %v1099_v26 }
 0x165   : > { %v1101_v28 = vpop.f32.mrb[13].mxu0 }
 0x166   : > { %v1102_v29 = vadd.f32 %v1101_v28, %v1100_v27  ;;  %v806_v28 = vpop.permute.xlu1 %805 }
 0x168   : > { %v1103_v30 = vpop.f32.mrb[14].mxu0  ;;  %1203 = vmatprep.mubr.f32.mxu1 %v1102_v29 }
 0x169   : > { %v1104_v31 = vpop.f32.mrb[15].mxu0 }
 0x16a   : > { %v1105_v32 = vadd.f32 %v1104_v31, %v1103_v30  ;;  %v871_v30 = vmul.f32 %v806_v28, %v663_v23  ;;  %v801_v31 = vpop.permute.xlu0 %800  ;;  %v671_v23 = vld [vmem:[%s1840_s25 + $0x58] sm:$0xff] }
 0x16c   : > { %v1106_v33 = vpop.f32.mrb[16].mxu0  ;;  %1204 = vmatmul.mubr.f32.gmra.mrb[6].mxu1 %v1105_v32 }
 0x16d   : > { %v1107_v34 = vpop.f32.mrb[17].mxu0 }
 0x16e   : > { %v1108_v35 = vadd.f32 %v1107_v34, %v1106_v33  ;;  %v870_v33 = vmul.f32 %v801_v31, %v662_v25  ;;  %v670_v25 = vld [vmem:[%s1840_s25 + $0x50] sm:$0xff] }
 0x170   : > { %v1109_v36 = vpop.f32.mrb[18].mxu0  ;;  %1206 = vmatprep.mubr.f32.mxu1 %v1108_v35 }
 0x171   : > { %v1110_v37 = vpop.f32.mrb[19].mxu0 }
 0x172   : > { %v1111_v38 = vadd.f32 %v1110_v37, %v1109_v36  ;;  %v665_v37 = vld [vmem:[%s1840_s25 + $0x28] sm:$0xff] }
 0x174   : > { %v1112_v39 = vpop.f32.mrb[20].mxu0  ;;  %1207 = vmatmul.mubr.f32.gmra.mrb[8].mxu1 %v1111_v38 }
 0x175   : > { %v1113_v40 = vpop.f32.mrb[21].mxu0 }
 0x176   : > { %v1114_v41 = vadd.f32 %v1113_v40, %v1112_v39  ;;  %v664_v39 = vld [vmem:[%s1840_s25 + $0x20] sm:$0xff] }
 0x178   : > { %v1115_v42 = vpop.f32.mrb[22].mxu0  ;;  %1209 = vmatprep.mubr.f32.mxu1 %v1114_v41 }
 0x179   : > { %v1116_v43 = vpop.f32.mrb[23].mxu0 }
 0x17a   : > { %v1117_v44 = vadd.f32 %v1116_v43, %v1115_v42  ;;  %v816_v42 = vpop.permute.xlu1 %815 }
 0x17c   : > { %v1118_v45 = vpop.f32.mrb[24].mxu0  ;;  %1210 = vmatmul.mubr.f32.gmra.mrb[10].mxu1 %v1117_v44  ;;  %v873_v44 = vmul.f32 %v816_v42, %v665_v37  ;;  %v672_v37 = vld [vmem:[%s1840_s25 + $0x60] sm:$0xff] }
 0x17d   : > { %v1119_v46 = vpop.f32.mrb[25].mxu0 }
 0x17e   : > { %v1120_v47 = vadd.f32 %v1119_v46, %v1118_v45  ;;  %v811_v45 = vpop.permute.xlu0 %810 }
 0x180   : > { %v1121_v48 = vpop.f32.mrb[26].mxu0  ;;  %1212 = vmatprep.mubr.f32.mxu1 %v1120_v47  ;;  %v872_v47 = vmul.f32 %v811_v45, %v664_v39 }
 0x181   : > { %v1122_v49 = vpop.f32.mrb[27].mxu0 }
 0x182   : > { %v1123_v50 = vadd.f32 %v1122_v49, %v1121_v48 }
 0x184   : > { %v1124_v51 = vpop.f32.mrb[28].mxu0  ;;  %1213 = vmatmul.mubr.f32.gmra.mrb[12].mxu1 %v1123_v50 }
 0x185   : > { %v1125_v52 = vpop.f32.mrb[29].mxu0 }
 0x186   : > { %v1126_v53 = vadd.f32 %v1125_v52, %v1124_v51  ;;  %v667_v51 = vld [vmem:[%s1840_s25 + $0x38] sm:$0xff] }
 0x188   : > { %v1127_v54 = vpop.f32.mrb[30].mxu0  ;;  %1215 = vmatprep.mubr.f32.mxu1 %v1126_v53  ;;  %v666_v53 = vld [vmem:[%s1840_s25 + $0x30] sm:$0xff] }
 0x189   : > { %v1128_v55 = vpop.f32.mrb[31].mxu0 }
 0x18a   : > { %v1129_v56 = vadd.f32 %v1128_v55, %v1127_v54 }
 0x18c   : > { %1216 = vmatmul.mubr.f32.gmra.mrb[14].mxu1 %v1129_v56  ;;  %v826_v56 = vpop.permute.xlu1 %825 }
 0x227   : > { %v1196_v10 = vpop.f32.mrb[0].mxu1 }
 0x228   : > { %v627_v12 = vmax.f32 %v1196_v10, 0.0  ;;  %v547_v13 = vpop.f32.mrb[1].mxu1 }
 0x229   : > { %v626_v15 = vmax.f32 %v547_v13, 0.0  ;;  %v668_v13 = vld [vmem:[%s1840_s25 + $0x40] sm:$0xff] }
 0x22a   : > { %v757_v18 = vmul.f32 %v684_v60, %v627_v12 }
 0x22b   : > { %v756_v20 = vmul.f32 %v679_v58, %v626_v15  ;;  %v875_v58 = vmul.f32 %v826_v56, %v667_v51 }
 0x22c   : > { %v885_v21 = vadd.f32 %v869_v16, %v757_v18  ;;  %v836_v16 = vpop.permute.xlu1 %835 }
 0x22d   : > { %v884_v22 = vadd.f32 %v868_v19, %v756_v20  ;;  %v877_v18 = vmul.f32 %v836_v16, %v669_v11 }
 0x22e   : > { %901 = vst [vmem:[%s1845_s13 + $0x8] sm:$0xff] %v885_v21 }
 0x22f   : > { %900 = vst [vmem:[%s1845_s13] sm:$0xff] %v884_v22  ;;  %v1199_v24 = vpop.f32.mrb[2].mxu1 }
 0x230   : > { %v629_v26 = vmax.f32 %v1199_v24, 0.0  ;;  %v557_v27 = vpop.f32.mrb[3].mxu1  ;;  %v846_v28 = vpop.permute.xlu1 %845 }
 0x231   : > { %v628_v29 = vmax.f32 %v557_v27, 0.0 }
 0x232   : > { %v759_v32 = vmul.f32 %v694_v59, %v629_v26  ;;  %v821_v59 = vpop.permute.xlu0 %820 }
 0x233   : > { %v758_v34 = vmul.f32 %v689_v57, %v628_v29 }
 0x234   : > { %v887_v35 = vadd.f32 %v871_v30, %v759_v32  ;;  %v879_v30 = vmul.f32 %v846_v28, %v671_v23 }
 0x235   : > { %v886_v36 = vadd.f32 %v870_v33, %v758_v34 }
 0x236   : > { %903 = vst [vmem:[%s1845_s13 + $0x18] sm:$0xff] %v887_v35  ;;  %v673_v35 = vld [vmem:[%s1840_s25 + $0x68] sm:$0xff] }
 0x237   : > { %902 = vst [vmem:[%s1845_s13 + $0x10] sm:$0xff] %v886_v36  ;;  %v1202_v38 = vpop.f32.mrb[4].mxu1 }
 0x238   : > { %v631_v40 = vmax.f32 %v1202_v38, 0.0  ;;  %v567_v41 = vpop.f32.mrb[5].mxu1 }
 0x239   : > { %v630_v43 = vmax.f32 %v567_v41, 0.0 }
 0x23a   : > { %v761_v46 = vmul.f32 %v704_v61, %v631_v40  ;;  %v874_v61 = vmul.f32 %v821_v59, %v666_v53  ;;  %v856_v40 = vpop.permute.xlu1 %855 }
 0x23b   : > { %v760_v48 = vmul.f32 %v699_v62, %v630_v43  ;;  %v881_v42 = vmul.f32 %v856_v40, %v673_v35 }
 0x23c   : > { %v889_v49 = vadd.f32 %v873_v44, %v761_v46 }
 0x23d   : > { %v888_v50 = vadd.f32 %v872_v47, %v760_v48  ;;  %v675_v47 = vld [vmem:[%s1840_s25 + $0x78] sm:$0xff] }
 0x23e   : > { %905 = vst [vmem:[%s1845_s13 + $0x28] sm:$0xff] %v889_v49  ;;  %v866_v48 = vpop.permute.xlu1 %865 }
 0x23f   : > { %904 = vst [vmem:[%s1845_s13 + $0x20] sm:$0xff] %v888_v50  ;;  %v1205_v52 = vpop.f32.mrb[6].mxu1  ;;  %v674_v50 = vld [vmem:[%s1840_s25 + $0x70] sm:$0xff] }
 0x240   : > { %v633_v54 = vmax.f32 %v1205_v52, 0.0  ;;  %v577_v55 = vpop.f32.mrb[7].mxu1 }
 0x241   : > { %v632_v57 = vmax.f32 %v577_v55, 0.0 }
 0x242   : > { %v763_v60 = vmul.f32 %v1816_v63, %v633_v54  ;;  %v831_v63 = vpop.permute.xlu0 %830 }
 0x243   : > { %v762_v62 = vmul.f32 %v1818_v0, %v632_v57  ;;  %v876_v0 = vmul.f32 %v831_v63, %v668_v13 }
 0x244   : > { %v891_v9 = vadd.f32 %v875_v58, %v763_v60 }
 0x245   : > { %v890_v10 = vadd.f32 %v874_v61, %v762_v62 }
 0x246   : > { %907 = vst [vmem:[%s1845_s13 + $0x38] sm:$0xff] %v891_v9 }
 0x247   : > { %906 = vst [vmem:[%s1845_s13 + $0x30] sm:$0xff] %v890_v10  ;;  %v1208_v12 = vpop.f32.mrb[8].mxu1 }
 0x248   : > { %v635_v14 = vmax.f32 %v1208_v12, 0.0  ;;  %v587_v15 = vpop.f32.mrb[9].mxu1 }
 0x249   : > { %v634_v17 = vmax.f32 %v587_v15, 0.0 }
 0x24a   : > { %v765_v19 = vmul.f32 %v1820_v1, %v635_v14  ;;  %v841_v1 = vpop.permute.xlu0 %840 }
 0x24b   : > { %v764_v20 = vmul.f32 %v1822_v2, %v634_v17  ;;  %v878_v2 = vmul.f32 %v841_v1, %v670_v25 }
 0x24c   : > { %v893_v21 = vadd.f32 %v877_v18, %v765_v19 }
 0x24d   : > { %v892_v22 = vadd.f32 %v876_v0, %v764_v20 }
 0x24e   : > { %909 = vst [vmem:[%s1845_s13 + $0x48] sm:$0xff] %v893_v21 }
 0x24f   : > { %908 = vst [vmem:[%s1845_s13 + $0x40] sm:$0xff] %v892_v22  ;;  %v1211_v24 = vpop.f32.mrb[10].mxu1 }
 0x250   : > { %v637_v26 = vmax.f32 %v1211_v24, 0.0  ;;  %v597_v27 = vpop.f32.mrb[11].mxu1 }
 0x251   : > { %v636_v29 = vmax.f32 %v597_v27, 0.0 }
 0x252   : > { %v767_v31 = vmul.f32 %v1824_v3, %v637_v26  ;;  %v851_v3 = vpop.permute.xlu0 %850 }
 0x253   : > { %v766_v32 = vmul.f32 %v1826_v4, %v636_v29  ;;  %v880_v43 = vmul.f32 %v851_v3, %v672_v37 }
 0x254   : > { %v895_v33 = vadd.f32 %v879_v30, %v767_v31 }
 0x255   : > { %v894_v34 = vadd.f32 %v878_v2, %v766_v32 }
 0x256   : > { %911 = vst [vmem:[%s1845_s13 + $0x58] sm:$0xff] %v895_v33  ;;  %v861_v51 = vpop.permute.xlu0 %860 }
 0x257   : > { %910 = vst [vmem:[%s1845_s13 + $0x50] sm:$0xff] %v894_v34  ;;  %v1214_v36 = vpop.f32.mrb[12].mxu1  ;;  %v882_v55 = vmul.f32 %v861_v51, %v674_v50 }
 0x258   : > { %v639_v38 = vmax.f32 %v1214_v36, 0.0  ;;  %v607_v39 = vpop.f32.mrb[13].mxu1 }
 0x259   : > { %v638_v41 = vmax.f32 %v607_v39, 0.0 }
 0x25a   : > { %v769_v4 = vmul.f32 %v1828_v5, %v639_v38  ;;  %v883_v5 = vmul.f32 %v866_v48, %v675_v47 }
 0x25b   : > { %v768_v44 = vmul.f32 %v1830_v6, %v638_v41 }
 0x25c   : > { %v897_v45 = vadd.f32 %v881_v42, %v769_v4 }
 0x25d   : > { %v896_v46 = vadd.f32 %v880_v43, %v768_v44 }
 0x25e   : > { %913 = vst [vmem:[%s1845_s13 + $0x68] sm:$0xff] %v897_v45 }
 0x25f   : > { %912 = vst [vmem:[%s1845_s13 + $0x60] sm:$0xff] %v896_v46  ;;  %v1217_v49 = vpop.f32.mrb[14].mxu1 }
 0x260   : > { %v641_v52 = vmax.f32 %v1217_v49, 0.0  ;;  %v617_v53 = vpop.f32.mrb[15].mxu1 }
 0x261   : > { %v640_v54 = vmax.f32 %v617_v53, 0.0 }
 0x262   : > { %v771_v6 = vmul.f32 %v1833_v7, %v641_v52 }
 0x263   : > { %v770_v56 = vmul.f32 %v1835_v8, %v640_v54 }
 0x264   : > { %v899_v57 = vadd.f32 %v883_v5, %v771_v6 }
 0x265   : > { %v898_v58 = vadd.f32 %v882_v55, %v770_v56 }
 0x266   : > { %915 = vst [vmem:[%s1845_s13 + $0x78] sm:$0xff] %v899_v57 }
 0x267   : > { %914 = vst [vmem:[%s1845_s13 + $0x70] sm:$0xff] %v898_v58 }
 0x268   : > { %1419 = shalt.err (!%p1416_p9)
}
 0x269   : > { %s1420_s7 = scalar_lea.hbm %s1890_s29, 2048  ;;  %s1424_s8 = scalar_lea.hbm %s1942_s4, 4096 }
 0x26a   : > { %p1421_p2 = scmp.ne.s32.totalorder %s1890_s29, %s1420_s7  ;;  %p1425_p11 = scmp.lt.u32.totalorder %s1890_s29, %s1942_s4 }
 0x26b   : > { %p1426_p1 = scmp.lt.u32.totalorder %s1424_s8, %s1420_s7  ;;  %p1428_p6 = scmp.lt.u32.totalorder %s1420_s7, %s1890_s29 }
 0x26c   : > { %p1422_p0 = pnand %p1421_p2, %p1604_p12 }
 0x26d   : > { %p1427_p4 = por %p1426_p1, %p1425_p11 }
 0x26e   : > { %p1423_p5 = pneg %p1422_p0 }
 0x26f   : > { %p1429_p8 = por %p1428_p6, %p1427_p4 }
 0x271   : > { %p1430_p10 = pnand %p1429_p8, %p1423_p5 }
 0x273   : > { %1433 = shalt.err (!%p1430_p10)
}
 0x274   : > { %s1486_s13 = smov 128   ;;  %s1487_s14 = smov 8  }
 0x275   : > { %1288 = dma.vmem_to_hbm [thread:$0]  (%p1604_p12), %s1892_s23, 2048, %s1890_s29, %s917_s19, %s1486_s13, %s1486_s13, %s1487_s14  }
 0x276 PF: > { %s945_s9 = sand.u32 1, %s1464_s15   ;;  %p1957_p13 = scmp.ne.s32.totalorder %s1947_s22, 0 }
 0x277   : > { %p1958_p3 = scmp.ge.s32.totalorder %s1476_s18, 2  ;;  %s946_s28 = scalar_lea.sflag [#allocation4], %s945_s9 }
 0x279   : > { %p1299_p7 = pnand %p1958_p3, %p1957_p13 }
 0x27b   : > { %1459 = dma.done.wait (!%p1299_p7), %s946_s28, 2048  }
 0x27c   : > { %1461 = vsyncadd (!%p1299_p7), %s946_s28, 4294965248  ;;  %p18_p9 = scmp.ge.s32.totalorder %s1569_s27, 4   ;;  %s1959_s15 = smov %s1468_s16 }
 0x27d   : > { %s1960_s16 = smov %s1472_s17  ;;  %s1961_s17 = smov %s1600_s24 }
 0x27e   : > { %s1962_s18 = smov %s1569_s27  ;;  %20 = sbr.rel (!%p18_p9) target bundleno = 6 (0x6), region = 89 }
 0x285   :  { %951 = vsyncpa [#allocation3], 1 }
 0x286   :  { %953 = vsyncpa [#allocation3 + $0x1], 1 }
 0x287   :  { %954 = vsyncpa [#allocation6], 1 }
 0x288   :  { %955 = vsyncpa [#allocation4], 1 }
 0x289   :  { %957 = vsyncpa [#allocation4 + $0x1], 1 }

</bundles_post_ra>
